<compile_context>
chip_gen: v5e
topology: v5e:2x2
jax: 0.10.0
libtpu: 0.0.40
codegen_flags: <defaults>
</compile_context>

<pallas_src>
import jax
import jax.numpy as jnp
from jax.experimental import pallas as pl
from jax.experimental.pallas import tpu as pltpu


_PACK_W = 128      # lane-aligned packing width for the fused weight blob
_ROW_ALIGN = 16    # bf16 sublane tile height


def _round_up(x, m):
    return ((x + m - 1) // m) * m


# ----------------------------------------------------------------------------
# Parameter packing (wrapper side, inside the jit)
# ----------------------------------------------------------------------------
def _pack_matrices(named_mats):
    """Pack (already transposed / padded) weights into one bf16 (rows,128) blob."""
    blocks, layout, off = [], {}, 0
    for name, m in named_mats:
        r, c = m.shape
        assert c <= _PACK_W, f"{name}: {c} cols exceeds {_PACK_W}-lane pack width"
        rp = _round_up(r, _ROW_ALIGN)
        blk = jnp.zeros((rp, _PACK_W), jnp.bfloat16)
        blk = blk.at[:r, :c].set(m.astype(jnp.bfloat16))
        blocks.append(blk)
        layout[name] = (off, r, c)       # r is already a 16-row multiple for every block
        off += rp
    return jnp.concatenate(blocks, axis=0), layout


def _pack_biases(named_biases):
    """Pack bias vectors as columns of one f32 (max_len, >=8) array."""
    max_len = _round_up(max(int(b.size) for _, b in named_biases), 8)
    ncols = max(8, len(named_biases))
    packed = jnp.zeros((max_len, ncols), jnp.float32)
    layout = {}
    for j, (name, b) in enumerate(named_biases):
        v = b.reshape(-1).astype(jnp.float32)
        packed = packed.at[: v.shape[0], j].set(v)
        layout[name] = (j, int(v.shape[0]))
    return packed, layout


# ----------------------------------------------------------------------------
# im2col (wrapper side, fused into the same jit as the pallas_call)
# ----------------------------------------------------------------------------
def _im2col_t(image, k=3, pad=1, row_pad=None):
    """Transposed im2col: (Cin*K*K, B*H*W); rows (cin,ky,kx), cols (b,h,w)."""
    B, Cin, H, W = image.shape
    xp = jnp.pad(image, ((0, 0), (0, 0), (pad, pad), (pad, pad)))
    patches = [xp[:, :, ky:ky + H, kx:kx + W] for ky in range(k) for kx in range(k)]
    cols = jnp.stack(patches, axis=2)            # (B, Cin, K*K, H, W)
    cols = cols.transpose(1, 2, 0, 3, 4)         # (Cin, K*K, B, H, W)
    cols = cols.reshape(Cin * k * k, B * H * W).astype(jnp.float32)
    if row_pad is not None and row_pad > cols.shape[0]:
        cols = jnp.pad(cols, ((0, row_pad - cols.shape[0]), (0, 0)))
    return cols


def _im2col(image, k=3, pad=1):
    """Reference-path im2col: (B*H*W, Cin*K*K)."""
    B, Cin, H, W = image.shape
    xp = jnp.pad(image, ((0, 0), (0, 0), (pad, pad), (pad, pad)))
    patches = [xp[:, :, ky:ky + H, kx:kx + W] for ky in range(k) for kx in range(k)]
    cols = jnp.stack(patches, axis=2)            # (B, Cin, K*K, H, W)
    cols = cols.transpose(0, 3, 4, 1, 2)         # (B, H, W, Cin, K*K)
    return cols.reshape(B * H * W, Cin * k * k).astype(jnp.float32)


# ----------------------------------------------------------------------------
# Pallas kernel: entire forward pass (features x batch orientation)
# ----------------------------------------------------------------------------
def _build_kernel(B, S, V, E, HW, w_layout, b_layout):
    f32 = jnp.float32
    bf16 = jnp.bfloat16
    cout_pad = w_layout['wcT'][1]     # padded conv-out channel count (16)

    def kernel(ids_ref, g_ref, invd_ref, colsT_ref, userT_ref, w_ref, b_ref, out_ref):
        def wmat(name):                      # bf16 (rows, cols) weight slice (16-row tiles)
            r0, nr, nc = w_layout[name]
            return w_ref[r0:r0 + nr, 0:nc]

        def bcol(name):                      # f32 (len, 1) bias column
            col, n = b_layout[name]
            return b_ref[0:n, col:col + 1]

        def mm(a, b):                        # bf16 x bf16 -> f32 accumulate
            return jnp.dot(a, b, preferred_element_type=f32)

        # ---------------- Text encoder ----------------
        # One-hot contraction against the precomputed mask-weighted segment
        # selector G gives weighted per-batch token counts (V, B).
        ids = ids_ref[...]                                           # (1, B*S) i32
        iota_v = jax.lax.broadcasted_iota(jnp.int32, (V, B * S), 0)
        onehot_t = (iota_v == ids).astype(f32)                       # (V, B*S)
        counts_t = mm(onehot_t.astype(bf16), g_ref[...])             # (V, B)
        pooled_t = mm(wmat('embT'), counts_t.astype(bf16)) * invd_ref[...]   # (H, B)
        text_t = jnp.maximum(
            mm(wmat('wtT'), pooled_t.astype(bf16)) + bcol('bt'), 0.0)        # (E, B)

        # ------------- Image encoder (lane-dense conv-as-matmul) -------------
        conv_t = jnp.maximum(
            mm(wmat('wcT'), colsT_ref[...]) + bcol('bc'), 0.0)       # (Cout_p, B*HW)
        # Global average pool as a lane-aligned reshape + XLU reduction
        # (HW is a multiple of 128, so no layout copy).
        gap_t = jnp.sum(conv_t.reshape(cout_pad, B, HW), axis=-1) * (1.0 / HW)  # (Cout_p, B)
        img_t = jnp.maximum(
            mm(wmat('wiT'), gap_t.astype(bf16)) + bcol('bi'), 0.0)       # (E, B)

        # ---------------- User encoder ----------------
        uh_t = jnp.maximum(
            mm(wmat('wu1T'), userT_ref[...]) + bcol('bu1'), 0.0)     # (Uh, B)
        usr_t = jnp.maximum(
            mm(wmat('wu2T'), uh_t.astype(bf16)) + bcol('bu2'), 0.0)      # (E, B)

        # ------------- Fusion (concat folded into lane-0-aligned splits) -----
        h_t = jnp.maximum(
            mm(wmat('wf1T_t'), text_t.astype(bf16))
            + mm(wmat('wf1T_i'), img_t.astype(bf16))
            + mm(wmat('wf1T_u'), usr_t.astype(bf16))
            + bcol('bf1'), 0.0)                                      # (F, B)

        # wf2 padded to a full 16-row bf16 tile; rows 1..15 are zeros.
        pred_pad = mm(wmat('wf2T'), h_t.astype(bf16)) + bcol('bf2')  # (16, B)
        out_ref[...] = pred_pad[0:8, :]                              # (8, B), row 0 is real

    return kernel


# ----------------------------------------------------------------------------
# Wrapper: one jit containing im2col, parameter packing and the pallas_call
# ----------------------------------------------------------------------------
@jax.jit
def multimodal_recommender(input_ids, attention_mask, image, user_features, params):
    (emb, wt, bt, wc, bc, wi, bi,
     wu1, bu1, wu2, bu2, wf1, bf1, wf2, bf2) = params
    B, S = input_ids.shape
    V = emb.shape[0]
    E = wt.shape[1]
    Fh = wf1.shape[1]
    CKK, COUT = wc.shape
    _, _, H, W = image.shape
    HW = H * W
    assert HW % 128 == 0, "in-kernel GAP reshape requires H*W to be a multiple of 128"

    CKK_P = _round_up(CKK, _ROW_ALIGN)        # 27 -> 32
    COUT_P = _round_up(COUT, _ROW_ALIGN)      # 8  -> 16
    OUT_P = _ROW_ALIGN                        # wf2 rows: 1 -> 16

    # ---------------- Data tensors in the layouts the kernel expects --------
    ids_flat = input_ids.reshape(1, B * S).astype(jnp.int32)
    # Mask-weighted segment selector G[q, b] = mask[q] * (token q belongs to batch b),
    # and the exact f32 1/denominator for the masked mean-pool (hoisted out of kernel).
    seg = jnp.repeat(jnp.arange(B, dtype=jnp.int32), S)
    G = ((seg[:, None] == jnp.arange(B, dtype=jnp.int32)[None, :]).astype(jnp.float32)
         * attention_mask.reshape(B * S, 1).astype(jnp.float32)).astype(jnp.bfloat16)
    inv_denom = (1.0 / (attention_mask.astype(jnp.float32).sum(axis=1) + 1e-6)
                 ).reshape(1, B).astype(jnp.float32)
    cols_t = _im2col_t(image, row_pad=CKK_P).astype(jnp.bfloat16)   # (CKK_P, B*HW)
    user_t = jnp.transpose(user_features).astype(jnp.bfloat16)      # (U, B)

    # ---------------- Tile-aligned weight / bias padding ---------------------
    wcT_p = jnp.zeros((COUT_P, CKK_P), jnp.float32).at[:COUT, :CKK].set(wc.T)
    bc_p = jnp.zeros((COUT_P,), jnp.float32).at[:COUT].set(bc.reshape(-1))
    wiT_p = jnp.zeros((E, COUT_P), jnp.float32).at[:, :COUT].set(wi.T)
    wf2T_p = jnp.zeros((OUT_P, Fh), jnp.float32).at[0:1, :].set(wf2.T)
    bf2_p = jnp.zeros((OUT_P,), jnp.float32).at[:bf2.size].set(bf2.reshape(-1))

    # Pack all parameters into two arrays (one bf16 weight blob, one f32 bias pack).
    w_packed, w_layout = _pack_matrices([
        ('embT', emb.T), ('wtT', wt.T),
        ('wcT', wcT_p), ('wiT', wiT_p),
        ('wu1T', wu1.T), ('wu2T', wu2.T),
        ('wf1T_t', wf1[0:E, :].T),          # lane-0-aligned fusion splits
        ('wf1T_i', wf1[E:2 * E, :].T),
        ('wf1T_u', wf1[2 * E:3 * E, :].T),
        ('wf2T', wf2T_p)])
    b_packed, b_layout = _pack_biases([
        ('bt', bt), ('bc', bc_p), ('bi', bi), ('bu1', bu1),
        ('bu2', bu2), ('bf1', bf1), ('bf2', bf2_p)])

    kernel = _build_kernel(B, S, V, E, HW, w_layout, b_layout)
    vmem = pl.BlockSpec(memory_space=pltpu.MemorySpace.VMEM)
    pred_t = pl.pallas_call(
        kernel,
        out_shape=jax.ShapeDtypeStruct((8, B), jnp.float32),   # lane-dense, row 0 is real
        in_specs=[vmem] * 7,
        out_specs=vmem,
    )(ids_flat, G, inv_denom, cols_t, user_t, w_packed, b_packed)
    return pred_t[0:1, :].T                                    # (B, 1), PyTorch convention


# ----------------------------------------------------------------------------
# Deterministic parameter init + pure-JAX reference for sanity checking
# ----------------------------------------------------------------------------
def init_params(key, vocab=32, text_h=32, emb_dim=32, user_dim=8,
                user_h=64, cin=3, cout=8, k=3, fusion_h=64):
    ks = jax.random.split(key, 14)
    def w(kk, shape, scale=0.1):
        return (scale * jax.random.normal(kk, shape)).astype(jnp.float32)
    params = (
        w(ks[0], (vocab, text_h)),                                   # emb table
        w(ks[1], (text_h, emb_dim)), w(ks[2], (1, emb_dim)),         # text proj
        w(ks[3], (cin * k * k, cout)), w(ks[4], (1, cout)),          # conv (im2col)
        w(ks[5], (cout, emb_dim)), w(ks[6], (1, emb_dim)),           # image proj
        w(ks[7], (user_dim, user_h)), w(ks[8], (1, user_h)),         # user fc1
        w(ks[9], (user_h, emb_dim)), w(ks[10], (1, emb_dim)),        # user fc2
        w(ks[11], (3 * emb_dim, fusion_h)), w(ks[12], (1, fusion_h)),  # fusion fc1
        w(ks[13], (fusion_h, 1)), jnp.zeros((1, 1), jnp.float32),      # fusion fc2
    )
    return params


def reference_forward(input_ids, attention_mask, image, user_features, params):
    (emb, wt, bt, wc, bc, wi, bi, wu1, bu1, wu2, bu2, wf1, bf1, wf2, bf2) = params
    hi = jax.lax.Precision.HIGHEST
    B = input_ids.shape[0]
    # text
    e = emb[input_ids]                                            # (B, S, H)
    m = attention_mask[:, :, None].astype(jnp.float32)
    pooled = (e * m).sum(1) / (attention_mask.sum(1, keepdims=True) + 1e-6)
    tf = jnp.maximum(jnp.dot(pooled, wt, precision=hi) + bt, 0.0)
    # image
    cols = _im2col(image)
    conv = jnp.maximum(jnp.dot(cols, wc, precision=hi) + bc, 0.0)
    gap = conv.reshape(B, -1, conv.shape[-1]).mean(1)
    imf = jnp.maximum(jnp.dot(gap, wi, precision=hi) + bi, 0.0)
    # user
    uh = jnp.maximum(jnp.dot(user_features, wu1, precision=hi) + bu1, 0.0)
    uf = jnp.maximum(jnp.dot(uh, wu2, precision=hi) + bu2, 0.0)
    # fusion
    fused = jnp.concatenate([tf, imf, uf], axis=1)
    h = jnp.maximum(jnp.dot(fused, wf1, precision=hi) + bf1, 0.0)
    return jnp.dot(h, wf2, precision=hi) + bf2


if __name__ == "__main__":
    key = jax.random.PRNGKey(0)
    k_ids, k_img, k_user, k_params = jax.random.split(key, 4)

    B, S, VOCAB = 2, 8, 32
    USER_DIM = 8
    IMG = (B, 3, 16, 16)   # NCHW, matching the PyTorch module's conv input

    input_ids = jax.random.randint(k_ids, (B, S), 0, VOCAB, dtype=jnp.int32)
    lengths = jnp.array([8, 5], dtype=jnp.int32)
    attention_mask = (jnp.arange(S)[None, :] < lengths[:, None]).astype(jnp.float32)
    image = jax.random.normal(k_img, IMG, dtype=jnp.float32)
    user_features = jax.random.normal(k_user, (B, USER_DIM), dtype=jnp.float32)

    params = init_params(k_params, vocab=VOCAB, user_dim=USER_DIM)

    pred = multimodal_recommender(input_ids, attention_mask, image,
                                  user_features, params)
    pred = jax.block_until_ready(pred)

    ref = reference_forward(input_ids, attention_mask, image,
                            user_features, params)
    assert pred.shape == (B, 1)
    assert jnp.allclose(pred, ref, rtol=2e-2, atol=2e-2), (pred, ref)

    # TODO(synk): rule-based adjustment branch (use_rule_based=True) not
    # implemented — source of apply_rule_based_adjustment was not provided.
    print("KERNEL_OK")
</pallas_src>

<mosaic_0001>
module attributes {stable_mosaic.version = 11 : i64} {
  func.func @kernel(%arg0: memref<1x16xi32, #tpu.memory_space<vmem>>, %arg1: memref<16x2xbf16, #tpu.memory_space<vmem>>, %arg2: memref<1x2xf32, #tpu.memory_space<vmem>>, %arg3: memref<32x512xbf16, #tpu.memory_space<vmem>>, %arg4: memref<8x2xbf16, #tpu.memory_space<vmem>>, %arg5: memref<416x128xbf16, #tpu.memory_space<vmem>>, %arg6: memref<64x8xf32, #tpu.memory_space<vmem>>, %arg7: memref<8x2xf32, #tpu.memory_space<vmem>>) attributes {dimension_semantics = [], scalar_prefetch = 0 : i64, scratch_operands = 0 : i64, tpu.core_type = #tpu.core_type<tc>} {
    %c0 = arith.constant 0 : index
    %c0_0 = arith.constant 0 : index
    %0 = vector.load %arg0[%c0, %c0_0] : memref<1x16xi32, #tpu.memory_space<vmem>>, vector<1x16xi32>
    %1 = tpu.iota {dimensions = array<i32: 0>} : vector<32x16xi32>
    %2 = vector.broadcast %0 : vector<1x16xi32> to vector<32x16xi32>
    %3 = arith.cmpi eq, %1, %2 : vector<32x16xi32>
    %4 = arith.extui %3 : vector<32x16xi1> to vector<32x16xi32>
    %5 = arith.sitofp %4 : vector<32x16xi32> to vector<32x16xf32>
    %6 = arith.truncf %5 : vector<32x16xf32> to vector<32x16xbf16>
    %c0_1 = arith.constant 0 : index
    %c0_2 = arith.constant 0 : index
    %7 = vector.load %arg1[%c0_1, %c0_2] : memref<16x2xbf16, #tpu.memory_space<vmem>>, vector<16x2xbf16>
    %cst = arith.constant dense<0.000000e+00> : vector<32x2xf32>
    %8 = tpu.matmul %6, %7, %cst {dimension_numbers = #tpu.dot_dimension_numbers<[1], [0], [0], [1], [0, 0, 1, 1], [], []>} : vector<32x16xbf16>, vector<16x2xbf16>, vector<32x2xf32> -> vector<32x2xf32>
    %c0_3 = arith.constant 0 : index
    %c0_4 = arith.constant 0 : index
    %9 = vector.load %arg5[%c0_3, %c0_4] : memref<416x128xbf16, #tpu.memory_space<vmem>>, vector<32x32xbf16>
    %10 = arith.truncf %8 : vector<32x2xf32> to vector<32x2xbf16>
    %cst_5 = arith.constant dense<0.000000e+00> : vector<32x2xf32>
    %11 = tpu.matmul %9, %10, %cst_5 {dimension_numbers = #tpu.dot_dimension_numbers<[1], [0], [0], [1], [0, 0, 1, 1], [], []>} : vector<32x32xbf16>, vector<32x2xbf16>, vector<32x2xf32> -> vector<32x2xf32>
    %c0_6 = arith.constant 0 : index
    %c0_7 = arith.constant 0 : index
    %12 = vector.load %arg2[%c0_6, %c0_7] : memref<1x2xf32, #tpu.memory_space<vmem>>, vector<1x2xf32>
    %13 = vector.broadcast %12 : vector<1x2xf32> to vector<32x2xf32>
    %14 = arith.mulf %11, %13 : vector<32x2xf32>
    %c32 = arith.constant 32 : index
    %c0_8 = arith.constant 0 : index
    %15 = vector.load %arg5[%c32, %c0_8] : memref<416x128xbf16, #tpu.memory_space<vmem>>, vector<32x32xbf16>
    %16 = arith.truncf %14 : vector<32x2xf32> to vector<32x2xbf16>
    %cst_9 = arith.constant dense<0.000000e+00> : vector<32x2xf32>
    %17 = tpu.matmul %15, %16, %cst_9 {dimension_numbers = #tpu.dot_dimension_numbers<[1], [0], [0], [1], [0, 0, 1, 1], [], []>} : vector<32x32xbf16>, vector<32x2xbf16>, vector<32x2xf32> -> vector<32x2xf32>
    %c0_10 = arith.constant 0 : index
    %c0_11 = arith.constant 0 : index
    %18 = vector.load %arg6[%c0_10, %c0_11] : memref<64x8xf32, #tpu.memory_space<vmem>>, vector<32x1xf32>
    %19 = vector.broadcast %18 : vector<32x1xf32> to vector<32x2xf32>
    %20 = arith.addf %17, %19 : vector<32x2xf32>
    %cst_12 = arith.constant 0.000000e+00 : f32
    %21 = vector.broadcast %cst_12 : f32 to vector<32x2xf32>
    %22 = arith.maximumf %20, %21 : vector<32x2xf32>
    %c64 = arith.constant 64 : index
    %c0_13 = arith.constant 0 : index
    %23 = vector.load %arg5[%c64, %c0_13] : memref<416x128xbf16, #tpu.memory_space<vmem>>, vector<16x32xbf16>
    %c0_14 = arith.constant 0 : index
    %c0_15 = arith.constant 0 : index
    %24 = vector.load %arg3[%c0_14, %c0_15] : memref<32x512xbf16, #tpu.memory_space<vmem>>, vector<32x512xbf16>
    %cst_16 = arith.constant dense<0.000000e+00> : vector<16x512xf32>
    %25 = tpu.matmul %23, %24, %cst_16 {dimension_numbers = #tpu.dot_dimension_numbers<[1], [0], [0], [1], [0, 0, 1, 1], [], []>} : vector<16x32xbf16>, vector<32x512xbf16>, vector<16x512xf32> -> vector<16x512xf32>
    %c0_17 = arith.constant 0 : index
    %c1 = arith.constant 1 : index
    %26 = vector.load %arg6[%c0_17, %c1] : memref<64x8xf32, #tpu.memory_space<vmem>>, vector<16x1xf32>
    %27 = vector.broadcast %26 : vector<16x1xf32> to vector<16x512xf32>
    %28 = arith.addf %25, %27 : vector<16x512xf32>
    %cst_18 = arith.constant 0.000000e+00 : f32
    %29 = vector.broadcast %cst_18 : f32 to vector<16x512xf32>
    %30 = arith.maximumf %28, %29 : vector<16x512xf32>
    %31 = vector.shape_cast %30 : vector<16x512xf32> to vector<16x2x256xf32>
    %cst_19 = arith.constant dense<0.000000e+00> : vector<16x2xf32>
    %32 = vector.multi_reduction <add>, %31, %cst_19 [2] : vector<16x2x256xf32> to vector<16x2xf32>
    %cst_20 = arith.constant 3.906250e-03 : f32
    %33 = vector.broadcast %cst_20 : f32 to vector<16x2xf32>
    %34 = arith.mulf %32, %33 : vector<16x2xf32>
    %c80 = arith.constant 80 : index
    %c0_21 = arith.constant 0 : index
    %35 = vector.load %arg5[%c80, %c0_21] : memref<416x128xbf16, #tpu.memory_space<vmem>>, vector<32x16xbf16>
    %36 = arith.truncf %34 : vector<16x2xf32> to vector<16x2xbf16>
    %cst_22 = arith.constant dense<0.000000e+00> : vector<32x2xf32>
    %37 = tpu.matmul %35, %36, %cst_22 {dimension_numbers = #tpu.dot_dimension_numbers<[1], [0], [0], [1], [0, 0, 1, 1], [], []>} : vector<32x16xbf16>, vector<16x2xbf16>, vector<32x2xf32> -> vector<32x2xf32>
    %c0_23 = arith.constant 0 : index
    %c2 = arith.constant 2 : index
    %38 = vector.load %arg6[%c0_23, %c2] : memref<64x8xf32, #tpu.memory_space<vmem>>, vector<32x1xf32>
    %39 = vector.broadcast %38 : vector<32x1xf32> to vector<32x2xf32>
    %40 = arith.addf %37, %39 : vector<32x2xf32>
    %cst_24 = arith.constant 0.000000e+00 : f32
    %41 = vector.broadcast %cst_24 : f32 to vector<32x2xf32>
    %42 = arith.maximumf %40, %41 : vector<32x2xf32>
    %c112 = arith.constant 112 : index
    %c0_25 = arith.constant 0 : index
    %43 = vector.load %arg5[%c112, %c0_25] : memref<416x128xbf16, #tpu.memory_space<vmem>>, vector<64x8xbf16>
    %c0_26 = arith.constant 0 : index
    %c0_27 = arith.constant 0 : index
    %44 = vector.load %arg4[%c0_26, %c0_27] : memref<8x2xbf16, #tpu.memory_space<vmem>>, vector<8x2xbf16>
    %cst_28 = arith.constant dense<0.000000e+00> : vector<64x2xf32>
    %45 = tpu.matmul %43, %44, %cst_28 {dimension_numbers = #tpu.dot_dimension_numbers<[1], [0], [0], [1], [0, 0, 1, 1], [], []>} : vector<64x8xbf16>, vector<8x2xbf16>, vector<64x2xf32> -> vector<64x2xf32>
    %c0_29 = arith.constant 0 : index
    %c3 = arith.constant 3 : index
    %46 = vector.load %arg6[%c0_29, %c3] : memref<64x8xf32, #tpu.memory_space<vmem>>, vector<64x1xf32>
    %47 = vector.broadcast %46 : vector<64x1xf32> to vector<64x2xf32>
    %48 = arith.addf %45, %47 : vector<64x2xf32>
    %cst_30 = arith.constant 0.000000e+00 : f32
    %49 = vector.broadcast %cst_30 : f32 to vector<64x2xf32>
    %50 = arith.maximumf %48, %49 : vector<64x2xf32>
    %c176 = arith.constant 176 : index
    %c0_31 = arith.constant 0 : index
    %51 = vector.load %arg5[%c176, %c0_31] : memref<416x128xbf16, #tpu.memory_space<vmem>>, vector<32x64xbf16>
    %52 = arith.truncf %50 : vector<64x2xf32> to vector<64x2xbf16>
    %cst_32 = arith.constant dense<0.000000e+00> : vector<32x2xf32>
    %53 = tpu.matmul %51, %52, %cst_32 {dimension_numbers = #tpu.dot_dimension_numbers<[1], [0], [0], [1], [0, 0, 1, 1], [], []>} : vector<32x64xbf16>, vector<64x2xbf16>, vector<32x2xf32> -> vector<32x2xf32>
    %c0_33 = arith.constant 0 : index
    %c4 = arith.constant 4 : index
    %54 = vector.load %arg6[%c0_33, %c4] : memref<64x8xf32, #tpu.memory_space<vmem>>, vector<32x1xf32>
    %55 = vector.broadcast %54 : vector<32x1xf32> to vector<32x2xf32>
    %56 = arith.addf %53, %55 : vector<32x2xf32>
    %cst_34 = arith.constant 0.000000e+00 : f32
    %57 = vector.broadcast %cst_34 : f32 to vector<32x2xf32>
    %58 = arith.maximumf %56, %57 : vector<32x2xf32>
    %c208 = arith.constant 208 : index
    %c0_35 = arith.constant 0 : index
    %59 = vector.load %arg5[%c208, %c0_35] : memref<416x128xbf16, #tpu.memory_space<vmem>>, vector<64x32xbf16>
    %60 = arith.truncf %22 : vector<32x2xf32> to vector<32x2xbf16>
    %cst_36 = arith.constant dense<0.000000e+00> : vector<64x2xf32>
    %61 = tpu.matmul %59, %60, %cst_36 {dimension_numbers = #tpu.dot_dimension_numbers<[1], [0], [0], [1], [0, 0, 1, 1], [], []>} : vector<64x32xbf16>, vector<32x2xbf16>, vector<64x2xf32> -> vector<64x2xf32>
    %c272 = arith.constant 272 : index
    %c0_37 = arith.constant 0 : index
    %62 = vector.load %arg5[%c272, %c0_37] : memref<416x128xbf16, #tpu.memory_space<vmem>>, vector<64x32xbf16>
    %63 = arith.truncf %42 : vector<32x2xf32> to vector<32x2xbf16>
    %cst_38 = arith.constant dense<0.000000e+00> : vector<64x2xf32>
    %64 = tpu.matmul %62, %63, %cst_38 {dimension_numbers = #tpu.dot_dimension_numbers<[1], [0], [0], [1], [0, 0, 1, 1], [], []>} : vector<64x32xbf16>, vector<32x2xbf16>, vector<64x2xf32> -> vector<64x2xf32>
    %65 = arith.addf %61, %64 : vector<64x2xf32>
    %c336 = arith.constant 336 : index
    %c0_39 = arith.constant 0 : index
    %66 = vector.load %arg5[%c336, %c0_39] : memref<416x128xbf16, #tpu.memory_space<vmem>>, vector<64x32xbf16>
    %67 = arith.truncf %58 : vector<32x2xf32> to vector<32x2xbf16>
    %cst_40 = arith.constant dense<0.000000e+00> : vector<64x2xf32>
    %68 = tpu.matmul %66, %67, %cst_40 {dimension_numbers = #tpu.dot_dimension_numbers<[1], [0], [0], [1], [0, 0, 1, 1], [], []>} : vector<64x32xbf16>, vector<32x2xbf16>, vector<64x2xf32> -> vector<64x2xf32>
    %69 = arith.addf %65, %68 : vector<64x2xf32>
    %c0_41 = arith.constant 0 : index
    %c5 = arith.constant 5 : index
    %70 = vector.load %arg6[%c0_41, %c5] : memref<64x8xf32, #tpu.memory_space<vmem>>, vector<64x1xf32>
    %71 = vector.broadcast %70 : vector<64x1xf32> to vector<64x2xf32>
    %72 = arith.addf %69, %71 : vector<64x2xf32>
    %cst_42 = arith.constant 0.000000e+00 : f32
    %73 = vector.broadcast %cst_42 : f32 to vector<64x2xf32>
    %74 = arith.maximumf %72, %73 : vector<64x2xf32>
    %c400 = arith.constant 400 : index
    %c0_43 = arith.constant 0 : index
    %75 = vector.load %arg5[%c400, %c0_43] : memref<416x128xbf16, #tpu.memory_space<vmem>>, vector<16x64xbf16>
    %76 = arith.truncf %74 : vector<64x2xf32> to vector<64x2xbf16>
    %cst_44 = arith.constant dense<0.000000e+00> : vector<16x2xf32>
    %77 = tpu.matmul %75, %76, %cst_44 {dimension_numbers = #tpu.dot_dimension_numbers<[1], [0], [0], [1], [0, 0, 1, 1], [], []>} : vector<16x64xbf16>, vector<64x2xbf16>, vector<16x2xf32> -> vector<16x2xf32>
    %c0_45 = arith.constant 0 : index
    %c6 = arith.constant 6 : index
    %78 = vector.load %arg6[%c0_45, %c6] : memref<64x8xf32, #tpu.memory_space<vmem>>, vector<16x1xf32>
    %79 = vector.broadcast %78 : vector<16x1xf32> to vector<16x2xf32>
    %80 = arith.addf %77, %79 : vector<16x2xf32>
    %81 = vector.extract_strided_slice %80 {offsets = [0, 0], sizes = [8, 2], strides = [1, 1]} : vector<16x2xf32> to vector<8x2xf32>
    %c0_46 = arith.constant 0 : index
    %c0_47 = arith.constant 0 : index
    %82 = vector.load %arg7[%c0_46, %c0_47] : memref<8x2xf32, #tpu.memory_space<vmem>>, vector<8x2xf32>
    tpu.vector_store %arg7[%c0_46, %c0_47], %81 {strides = array<i32>} : memref<8x2xf32, #tpu.memory_space<vmem>>, vector<8x2xf32>,
    return
  }
}

</mosaic_0001>

<bundles_post_ra>
// kernel: mul.5
= control target key start
LH: loop header
LB: loop body
LE: loop exit
PB: predicated region body
PF: predicated region fallthrough
CT: control target
= control target key end

     0   :  { %vm7_vm0 = vcmask 64512   ;;  %vm13_vm1 = vcmask 130112   ;;  %s40_s0 = inlined_call_operand.vmem [shape: f32[2,8], index: 0, kind: input, shape index: {}]   ;;  %s41_s1 = inlined_call_operand.vmem [shape: bf16[16], index: 1, kind: output, shape index: {}]  }
   0x1   :  { %v4_v0 = vld [vmem:[%s40_s0] sm:$0x3]  ;;  %s23_s0 = smov 8  }
   0x2   :  { %5 = vst [vmem:[#allocation1] sm:$0x3] %v4_v0 }
   0x9   :  { %v10_v1 = vld [vmem:[#allocation1 + $0x1] sm:$0x1]   ;;  %v6_v2 = vld [vmem:[#allocation1] sm:$0x1]  }
   0xa   :  { %11 = vrot.lane.b32.xlu0 %v10_v1, %s23_s0  ;;  %8 = vst.msk [vmem:[#allocation0] sm:$0x1] %vm7_vm0, %v6_v2  }
  0x7c   :  { %v12_v3 = vpop.permute.xlu0 %11  }
  0x7d   :  { %14 = vst.msk [vmem:[#allocation0] sm:$0x1] %vm13_vm1, %v12_v3  }
  0x84   :  { %v17_v4 = vld [vmem:[#allocation0] sm:$0x3] }
  0x85   :  { %v18_v5 = vpack.c.bf16 0.0, %v17_v4 }
  0x87   :  { %21 = vst [vmem:[%s41_s1] sm:$0x1] %v18_v5 }

// kernel: eq.8
= control target key start
LH: loop header
LB: loop body
LE: loop exit
PB: predicated region body
PF: predicated region fallthrough
CT: control target
= control target key end

     0   :  { %vm7_vm0 = vcmask 64512   ;;  %vm13_vm1 = vcmask 130112   ;;  %s39_s0 = inlined_call_operand.vmem [shape: s32[2,8], index: 0, kind: input, shape index: {}]   ;;  %s40_s1 = inlined_call_operand.vmem [shape: s32[16], index: 1, kind: output, shape index: {}]  }
   0x1   :  { %v4_v0 = vld [vmem:[%s39_s0] sm:$0x3]  ;;  %s22_s0 = smov 8  }
   0x2   :  { %5 = vst [vmem:[#allocation1] sm:$0x3] %v4_v0 }
   0x9   :  { %v10_v1 = vld [vmem:[#allocation1 + $0x1] sm:$0x1]   ;;  %v6_v2 = vld [vmem:[#allocation1] sm:$0x1]  }
   0xa   :  { %11 = vrot.lane.b32.xlu0 %v10_v1, %s22_s0  ;;  %8 = vst.msk [vmem:[#allocation0] sm:$0x1] %vm7_vm0, %v6_v2  }
  0x7c   :  { %v12_v3 = vpop.permute.xlu0 %11  }
  0x7d   :  { %14 = vst.msk [vmem:[#allocation0] sm:$0x1] %vm13_vm1, %v12_v3  }
  0x84   :  { %v17_v4 = vld [vmem:[#allocation0] sm:$0x1] }
  0x85   :  { %20 = vst [vmem:[%s40_s1] sm:$0x1] %v17_v4 }

// kernel: multimodal_recommender.1
= control target key start
LH: loop header
LB: loop body
LE: loop exit
PB: predicated region body
PF: predicated region fallthrough
CT: control target
= control target key end

     0   :  { %v28_v0 = vlaneseq  ;;  %v1549_v7 = vmov 0.0   ;;  %vm56_vm4 = vcmask 130048   ;;  %vm98_vm5 = vcmask 261120   ;;  %s2041_s1 = inlined_call_operand.vmem [shape: bf16[16,2], index: 1, kind: input, shape index: {}]   ;;  %s2042_s0 = inlined_call_operand.vmem [shape: s32[1,16], index: 0, kind: input, shape index: {}]   ;;  %s2043_s2 = inlined_call_operand.vmem [shape: f32[1,2], index: 2, kind: input, shape index: {}]   ;;  %s2044_s3 = inlined_call_operand.vmem [shape: bf16[32,512], index: 3, kind: input, shape index: {}]   ;;  %s2045_s5 = inlined_call_operand.vmem [shape: bf16[416,128], index: 5, kind: input, shape index: {}]   ;;  %s2046_s6 = inlined_call_operand.vmem [shape: f32[64,8], index: 6, kind: input, shape index: {}]   ;;  %s2047_s4 = inlined_call_operand.vmem [shape: bf16[8,2], index: 4, kind: input, shape index: {}]   ;;  %s2048_s7 = inlined_call_operand.vmem [shape: f32[8,2], index: 7, kind: output, shape index: {}]  }
   0x1   :  { %v1480_v1 = vld [vmem:[%s2041_s1] sm:$0xff]  ;;  %v1492_v15 = vld [vmem:[%s2044_s3 + $0x2c] sm:$0xf0]  ;;  %v1365_v20 = vld [vmem:[%s2044_s3 + $0x28] sm:$0xf]  ;;  %v1550_v36 = vmov 1  }
   0x2   :  { %v1545_v2 = vld [vmem:[%s2042_s0] ss:$0 sm:$0xff]  ;;  %v29_v3 = vshrl.u32 %v28_v0, 7  ;;  %70 = vmatpush.bf16.msra.mxu0 %v1480_v1  ;;  %1515 = vmatpush.bf16.msra.mxu1 %v1480_v1  ;;  %v1488_v18 = vld [vmem:[%s2044_s3 + $0xc] sm:$0xf0]  ;;  %v1670_v41 = vld [vmem:[%s2046_s6 + $0x8] sm:$0xff] }
   0x3   :  { %v1357_v14 = vld [vmem:[%s2044_s3 + $0x20] sm:$0xf]  ;;  %v1493_v21 = vld [vmem:[%s2044_s3 + $0x34] sm:$0xf0]  ;;  %v1349_v24 = vld [vmem:[%s2044_s3 + $0x8] sm:$0xf]  ;;  %1526 = vset.pattern.permute.xlu0 %v1550_v36 }
   0x4   :  { %v30_v4 = vadd.s32 8, %v29_v3  ;;  %vm34_vm0 = vcmp.eq.s32.totalorder %v29_v3, %v1545_v2  ;;  %v31_v5 = vadd.s32 16, %v29_v3  ;;  %v32_v6 = vadd.s32 24, %v29_v3  ;;  %v1341_v17 = vld [vmem:[%s2044_s3] sm:$0xf]  ;;  %v1496_v51 = vld [vmem:[%s2045_s5 + $0x38] sm:$0xff] }
   0x5   :  { %v1305_v8 = vsel %vm34_vm0, 1.0, %v1549_v7  ;;  %v1358_v16 = vor.u32 %v1492_v15, %v1357_v14  ;;  %v1342_v19 = vor.u32 %v1488_v18, %v1341_v17  ;;  %v1366_v22 = vor.u32 %v1493_v21, %v1365_v20  ;;  %v1629_v23 = vld [vmem:[%s2045_s5 + $0x20] sm:$0xff]  ;;  %v1489_v25 = vld [vmem:[%s2044_s3 + $0x14] sm:$0xf0]  ;;  %v1359_v28 = vld [vmem:[%s2044_s3 + $0x30] sm:$0xf0] }
   0x6   :  { %vm35_vm1 = vcmp.eq.s32.totalorder %v30_v4, %v1545_v2  ;;  %vm36_vm2 = vcmp.eq.s32.totalorder %v31_v5, %v1545_v2  ;;  %vm37_vm3 = vcmp.eq.s32.totalorder %v32_v6, %v1545_v2  ;;  %v1350_v26 = vor.u32 %v1489_v25, %v1349_v24  ;;  %v1490_v27 = vld [vmem:[%s2044_s3 + $0x24] sm:$0xf]  ;;  %v1343_v31 = vld [vmem:[%s2044_s3 + $0x10] sm:$0xf0]  ;;  %v1491_v39 = vld [vmem:[%s2044_s3 + $0x2c] sm:$0xf] }
   0x7   :  { %v1306_v9 = vsel %vm35_vm1, 1.0, %v1549_v7  ;;  %v1307_v10 = vsel %vm36_vm2, 1.0, %v1549_v7  ;;  %v1308_v11 = vsel %vm37_vm3, 1.0, %v1549_v7  ;;  %277 = vmatpush.bf16.msra.mxu3 %v1358_v16  ;;  %305 = vmatpush.bf16.msrb.mxu0 %v1366_v22  ;;  %v1486_v29 = vld [vmem:[%s2044_s3 + $0x4] sm:$0xf]  ;;  %v1362_v30 = vor.u32 %v1490_v27, %v1359_v28  ;;  %v1482_v52 = vld [vmem:[%s2045_s5 + $0x8] sm:$0xff] }
   0x8   :  { %v46_v12 = vpack.c.bf16 %v1306_v9, %v1305_v8  ;;  %v47_v13 = vpack.c.bf16 %v1308_v11, %v1307_v10  ;;  %v1346_v32 = vor.u32 %v1486_v29, %v1343_v31  ;;  %v1656_v35 = vld [vmem:[%s2046_s6] sm:$0xff]  ;;  %v1367_v40 = vld [vmem:[%s2044_s3 + $0x38] sm:$0xf0]  ;;  %v1487_v45 = vld [vmem:[%s2044_s3 + $0xc] sm:$0xf]  ;;  %vm887_vm6 = vcmask 1043456  }
   0x9   :  { %215 = vperm.xlu0 %1526, %v1656_v35   ;;  %v1370_v43 = vor.u32 %v1491_v39, %v1367_v40  ;;  %v1351_v46 = vld [vmem:[%s2044_s3 + $0x18] sm:$0xf0]  ;;  %v1481_v47 = vld [vmem:[%s2045_s5] sm:$0xff]  ;;  %vm874_vm7 = vcmask 64512   ;;  %v1706_v55 = vld [vmem:[%s2046_s6 + $0x30] sm:$0xff]  ;;  %v1551_v56 = vmov 3  }
   0xa   :  { %1313 = vmatmul.msk.bf16.vlgmr.msra.gmra.mxu0 %vm56_vm4, %v46_v12  ;;  %1314 = vmatmul.msk.bf16.vlgmr.msra.gmra.mxu1 %vm56_vm4, %v47_v13  ;;  %v1354_v48 = vor.u32 %v1487_v45, %v1351_v46  ;;  %v805_v49 = vld [vmem:[%s2047_s4] sm:$0xf]  ;;  %v1713_v57 = vld [vmem:[%s2046_s6 + $0x18] sm:$0xff]  ;;  %v1718_v58 = vld [vmem:[%s2046_s6 + $0x28] sm:$0xff]  ;;  %v1552_v6 = vmov 1983009808  }
   0xb   :  { %278 = vmatpush.bf16.msra.mxu3 %v1342_v19  ;;  %306 = vmatpush.bf16.msrb.mxu0 %v1350_v26  ;;  %v889_v50 = vsel %vm887_vm6, %v805_v49, 0  ;;  %v1497_v53 = vld [vmem:[%s2045_s5 + $0x40] sm:$0xff]  ;;  %v1498_v59 = vld [vmem:[%s2045_s5 + $0x48] sm:$0xff]  ;;  %v1499_v60 = vld [vmem:[%s2045_s5 + $0x50] sm:$0xff]  ;;  %v339_v7 = vunpack.c.l.s4 %v1552_v6  ;;  %v1553_v26 = vmov 1934713408  }
   0xc   :  { %v1701_v54 = vld [vmem:[%s2046_s6 + $0x20] sm:$0xff]  ;;  %1529 = vset.pattern.permute.xlu1 %v1551_v56  ;;  %1527 = vset.pattern.permute.xlu2 %v1551_v56  ;;  %v1735_v61 = vld [vmem:[%s2046_s6 + $0x10] sm:$0xff]  ;;  %v361_v27 = vunpack.c.l.s4 %v1553_v26  ;;  %vm336_vm8 = vcmask 1047556   ;;  %vm544_vm9 = vcmask 1041408   ;;  %vm745_vm10 = vcmask 1041409  }
   0xd   :  { %836 = vperm.xlu1 %1529, %v1701_v54   ;;  %846 = vperm.xlu2 %1527, %v1706_v55   ;;  %v1738_v12 = vunpack.c.0.s8 %v339_v7  ;;  %v1546_v14 = vld [vmem:[%s2043_s2] ss:$0 sm:$0xff]  ;;  %vm747_vm11 = vcmask 1042434   ;;  %vm749_vm12 = vcmask 1043459   ;;  %vm751_vm13 = vcmask 1044484  }
   0xe   :  { %1371 = vmatmul.msk.bf16.vlgmr.msra.gmra.mxu3 %vm98_vm5, %v1629_v23  ;;  %v1750_v40 = vunpack.c.0.s8 %v361_v27  ;;  %vm753_vm14 = vcmask 1045509   ;;  %vm755_vm15 = vcmask 1046534   ;;  %vm757_vm0 = vcmask 1047559  }
   0xf   :  { %291 = vmatpush.bf16.msrb.mxu3 %v1362_v30  ;;  %vm962_vm1 = vcmask 523264   ;;  %vm1299_vm2 = vcmask 15360  }
  0x11   :  { %220 = vperm.xlu0 %1526, %v1670_v41  }
  0x13   :  { %292 = vmatpush.bf16.msrb.mxu3 %v1346_v32 }
  0x15   :  { %831 = vperm.xlu1 %1529, %v1713_v57   ;;  %841 = vperm.xlu2 %1527, %v1718_v58  }
  0x17   :  { %898 = vmatpush.bf16.msra.mxu3 %v889_v50 }
  0x19   :  { %1528 = vset.pattern.permute.xlu0 %v1551_v56 }
  0x1a   :  { %1373 = vmatmul.msk.bf16.vlgmr.msrb.gmra.mxu0 %vm98_vm5, %v1629_v23 }
  0x1d   :  { %826 = vperm.xlu2 %1527, %v1735_v61  }
  0x1e   :  { %1372 = vmatmul.msk.bf16.vlgmr.msrb.gmra.mxu3 %vm98_vm5, %v1629_v23 }
  0x2e   :  { %1401 = vmatmul.msk.bf16.vlgmr.msra.gmra.mxu3 %vm874_vm7, %v1496_v51 }
  0x3e   :  { %1402 = vmatmul.msk.bf16.gmra.mxu3 %vm874_vm7, %v1497_v53 }
  0x4e   :  { %1403 = vmatmul.msk.bf16.gmra.mxu3 %vm874_vm7, %v1498_v59 }
  0x5e   :  { %1404 = vmatmul.msk.bf16.gmra.mxu3 %vm874_vm7, %v1499_v60 }
  0x7b   :  { %v216_v3 = vpop.permute.xlu0 %215 }
  0x83   :  { %v221_v29 = vpop.permute.xlu0 %220 }
  0x87   :  { %v72_v33 = vpop.f32.mrf.mxu0  ;;  %v77_v34 = vpop.f32.mrf.mxu1 }
  0x8f   :  { %v79_v37 = vpop.f32.mrf.mxu1  ;;  %v74_v42 = vpop.f32.mrf.mxu0 }
  0x90   :  { %v87_v38 = vpack.c.bf16 %v79_v37, %v77_v34  ;;  %v86_v44 = vpack.c.bf16 %v74_v42, %v72_v33 }
  0x91   :  { %v280_v63 = vpop.f32.mrf.mxu3 }
  0x92   :  { %111 = vmatpush.bf16.msrb.mxu1 %v87_v38  ;;  %v281_v4 = vadd.f32 %v280_v63, %v216_v3 }
  0x94   :  { %v327_v8 = vmax.f32 %v281_v4, 0.0 }
  0x96   :  { %112 = vmatpush.bf16.msrb.mxu1 %v86_v44  ;;  %v341_v15 = vperm.slane %v327_v8, %v1738_v12  ;;  %v335_v22 = vrot.slane %v327_v8, 4 }
  0x97   :  { %v308_v9 = vpop.f32.mrf.mxu0 }
  0x98   :  { %v309_v10 = vadd.f32 %v308_v9, %v216_v3  ;;  %v337_v33 = vsel %vm336_vm8, 0.0, %v335_v22 }
  0x99   :  { %1323 = vmatmul.msk.bf16.vlgmr.msrb.gmra.mxu1 %vm98_vm5, %v1481_v47  ;;  %v282_v2 = vpop.f32.mrf.mxu3  ;;  %v1754_v44 = vperm.slane %v337_v33, %v1738_v12 }
  0x9a   :  { %319 = vmatpush.bf16.msra.mxu1 %v1370_v43  ;;  %v329_v16 = vmax.f32 %v309_v10, 0.0  ;;  %v1745_v32 = vadd.f32 %v282_v2, %v221_v29 }
  0x9b   :  { %v370_v63 = vrot.slane %v1754_v44, 4 }
  0x9c   :  { %v351_v25 = vperm.slane %v329_v16, %v1738_v12  ;;  %v346_v31 = vrot.slane %v329_v16, 4  ;;  %v331_v46 = vmax.f32 %v1745_v32, 0.0 }
  0x9e   :  { %320 = vmatpush.bf16.msra.mxu1 %v1354_v48  ;;  %v356_v38 = vrot.slane %v351_v25, 4  ;;  %v347_v45 = vsel %vm336_vm8, 0.0, %v346_v31 }
  0x9f   :  { %v310_v49 = vpop.f32.mrf.mxu0  ;;  %v1762_v56 = vperm.slane %v347_v45, %v1738_v12 }
  0xa0   :  { %v357_v53 = vsel %vm336_vm8, %v356_v38, %v341_v15  ;;  %v1771_v2 = vadd.f32 %v310_v49, %v221_v29 }
  0xa1   :  { %v294_v11 = vpop.f32.mrf.mxu3  ;;  %v363_v7 = vperm.slane %v357_v53, %v1750_v40 }
  0xa2   :  { %v295_v13 = vadd.f32 %v294_v11, %v216_v3 }
  0xa4   :  { %v328_v20 = vmax.f32 %v295_v13, 0.0 }
  0xa6   :  { %v440_v30 = vrot.slane %v328_v20, 4  ;;  %v445_v34 = vperm.slane %v328_v20, %v1738_v12 }
  0xa8   :  { %v441_v42 = vsel %vm336_vm8, 0.0, %v440_v30  ;;  %v462_v50 = vrot.slane %v445_v34, 4 }
  0xa9   :  { %1324 = vmatmul.msk.bf16.gmra.mxu1 %vm98_vm5, %v1482_v52  ;;  %v296_v47 = vpop.f32.mrf.mxu3  ;;  %v449_v52 = vperm.slane %v441_v42, %v1738_v12 }
  0xaa   :  { %v297_v59 = vadd.f32 %v296_v47, %v221_v29 }
  0xab   :  { %v474_v8 = vrot.slane %v449_v52, 4 }
  0xac   :  { %v332_v13 = vmax.f32 %v297_v59, 0.0 }
  0xb9   :  { %1374 = vmatmul.msk.bf16.vlgmr.msra.gmra.mxu1 %vm98_vm5, %v1629_v23  ;;  %v358_v23 = vrot.slane %v341_v15, 4 }
  0xbb   :  { %v359_v37 = vsel %vm336_vm8, %v351_v25, %v358_v23  ;;  %v545_v23 = vsel %vm544_vm9, %v363_v7, 0.0 }
  0xbc   :  { %v367_v48 = vperm.slane %v359_v37, %v1750_v40  ;;  %v333_v37 = vmax.f32 %v1771_v2, 0.0  ;;  %v388_v2 = vrot.slane %v331_v46, 4 }
  0xbe   :  { %v555_v15 = vsel %vm544_vm9, %v367_v48, 0.0  ;;  %v1807_v53 = vperm.slane %v333_v37, %v1738_v12 }
 0x116   :  { %v114_v62 = vpop.f32.mrf.mxu1 }
 0x117   :  { %v128_v28 = vmul.f32 %v1546_v14, %v114_v62 }
 0x11e   :  { %v116_v1 = vpop.f32.mrf.mxu1 }
 0x11f   :  { %v129_v21 = vmul.f32 %v1546_v14, %v116_v1  ;;  %v1769_v1 = vperm.slane %v331_v46, %v1738_v12  ;;  %v389_v46 = vsel %vm336_vm8, 0.0, %v388_v2 }
 0x121   :  { %v136_v36 = vpack.c.bf16 %v129_v21, %v128_v28  ;;  %v410_v45 = vrot.slane %v1769_v1, 4 }
 0x126   :  { %v119_v5 = vpop.f32.mrf.mxu1 }
 0x127   :  { %v130_v18 = vmul.f32 %v1546_v14, %v119_v5 }
 0x12e   :  { %v121_v17 = vpop.f32.mrf.mxu1 }
 0x12f   :  { %v131_v19 = vmul.f32 %v1546_v14, %v121_v17 }
 0x131   :  { %v137_v24 = vpack.c.bf16 %v131_v19, %v130_v18 }
 0x133   :  { %184 = vmatpush.bf16.msra.mxu2 %v137_v24  ;;  %v380_v24 = vrot.slane %v363_v7, 4 }
 0x136   :  { %v322_v39 = vpop.f32.mrf.mxu1 }
 0x137   :  { %v323_v43 = vadd.f32 %v322_v39, %v216_v3  ;;  %185 = vmatpush.bf16.msra.mxu2 %v136_v36  ;;  %v382_v3 = vrot.slane %v367_v48, 4  ;;  %v371_v36 = vsel %vm336_vm8, %v1762_v56, %v370_v63  ;;  %v381_v48 = vsel %vm336_vm8, 0.0, %v380_v24 }
 0x138   :  { %v379_v49 = vperm.slane %v371_v36, %v1750_v40 }
 0x139   :  { %v330_v51 = vmax.f32 %v323_v43, 0.0  ;;  %v383_v19 = vsel %vm336_vm8, 0.0, %v382_v3 }
 0x13a   :  { %v560_v31 = vsel %vm544_vm9, %v383_v19, 0.0 }
 0x13b   :  { %v450_v60 = vrot.slane %v330_v51, 4  ;;  %v455_v62 = vperm.slane %v330_v51, %v1738_v12 }
 0x13d   :  { %v451_v4 = vsel %vm336_vm8, 0.0, %v450_v60  ;;  %v460_v5 = vrot.slane %v455_v62, 4  ;;  %v463_v6 = vsel %vm336_vm8, %v455_v62, %v462_v50  ;;  %v368_v50 = vrot.slane %v1762_v56, 4 }
 0x13e   :  { %v459_v9 = vperm.slane %v451_v4, %v1738_v12  ;;  %v324_v10 = vpop.f32.mrf.mxu1  ;;  %v471_v11 = vperm.slane %v463_v6, %v1750_v40  ;;  %v550_v62 = vsel %vm544_vm9, %v381_v48, 0.0  ;;  %v575_v56 = vsel %vm544_vm9, %v379_v49, 0.0 }
 0x13f   :  { %v325_v14 = vadd.f32 %v324_v10, %v221_v29  ;;  %v461_v16 = vsel %vm336_vm8, %v460_v5, %v445_v34  ;;  %v1788_v29 = vperm.slane %v332_v13, %v1738_v12  ;;  %v411_v4 = vsel %vm336_vm8, %v1807_v53, %v410_v45 }
 0x140   :  { %v556_v17 = vsel %vm544_vm9, %v471_v11, 0.0  ;;  %v467_v18 = vperm.slane %v461_v16, %v1750_v40  ;;  %v486_v20 = vrot.slane %v471_v11, 4  ;;  %v475_v28 = vsel %vm336_vm8, %v459_v9, %v474_v8 }
 0x141   :  { %v334_v21 = vmax.f32 %v325_v14, 0.0  ;;  %v557_v22 = vadd.f32 %v556_v17, %v555_v15  ;;  %v483_v42 = vperm.slane %v475_v28, %v1750_v40  ;;  %v472_v43 = vrot.slane %v459_v9, 4 }
 0x142   :  { %v546_v25 = vsel %vm544_vm9, %v467_v18, 0.0  ;;  %v487_v26 = vsel %vm336_vm8, 0.0, %v486_v20  ;;  %v484_v27 = vrot.slane %v467_v18, 4  ;;  %v514_v47 = vrot.slane %v1788_v29, 4 }
 0x143   :  { %558 = vadd.xlane.f32.xlu0 %v557_v22  ;;  %v547_v30 = vadd.f32 %v546_v25, %v545_v23  ;;  %v561_v33 = vsel %vm544_vm9, %v487_v26, 0.0  ;;  %v1796_v38 = vperm.slane %v334_v21, %v1738_v12  ;;  %v576_v59 = vsel %vm544_vm9, %v483_v42, 0.0  ;;  %v1837_v25 = vld [vmem:[%s2046_s6 + $0x38] sm:$0xff] }
 0x144   :  { %v562_v34 = vadd.f32 %v561_v33, %v560_v31  ;;  %v485_v39 = vsel %vm336_vm8, 0.0, %v484_v27  ;;  %v473_v63 = vsel %vm336_vm8, %v472_v43, %v449_v52  ;;  %v492_v5 = vrot.slane %v332_v13, 4 }
 0x145   :  { %548 = vadd.xlane.f32.xlu1 %v547_v30  ;;  %v551_v51 = vsel %vm544_vm9, %v485_v39, 0.0  ;;  %v515_v60 = vsel %vm336_vm8, %v1796_v38, %v514_v47  ;;  %v577_v6 = vadd.f32 %v576_v59, %v575_v56  ;;  %v369_v8 = vsel %vm336_vm8, %v368_v50, %v1754_v44 }
 0x146   :  { %563 = vadd.xlane.f32.xlu2 %v562_v34  ;;  %v552_v3 = vadd.f32 %v551_v51, %v550_v62  ;;  %v523_v7 = vperm.slane %v515_v60, %v1750_v40  ;;  %v479_v9 = vperm.slane %v473_v63, %v1750_v40  ;;  %v502_v52 = vrot.slane %v334_v21, 4 }
 0x147   :  { %v419_v32 = vperm.slane %v411_v4, %v1750_v40  ;;  %v375_v10 = vperm.slane %v369_v8, %v1750_v40  ;;  %v493_v11 = vsel %vm336_vm8, 0.0, %v492_v5  ;;  %v398_v14 = vrot.slane %v333_v37, 4 }
 0x148   :  { %v596_v13 = vsel %vm544_vm9, %v523_v7, 0.0  ;;  %v566_v15 = vsel %vm544_vm9, %v479_v9, 0.0  ;;  %v538_v16 = vrot.slane %v523_v7, 4  ;;  %v397_v44 = vperm.slane %v389_v46, %v1738_v12 }
 0x149   :  { %v503_v17 = vsel %vm336_vm8, 0.0, %v502_v52  ;;  %v595_v18 = vsel %vm544_vm9, %v419_v32, 0.0  ;;  %v490_v19 = vrot.slane %v483_v42, 4  ;;  %v501_v20 = vperm.slane %v493_v11, %v1738_v12 }
 0x14a   :  { %v597_v21 = vadd.f32 %v596_v13, %v595_v18  ;;  %v565_v22 = vsel %vm544_vm9, %v375_v10, 0.0  ;;  %v434_v23 = vrot.slane %v419_v32, 4  ;;  %v386_v26 = vrot.slane %v379_v49, 4 }
 0x14b   :  { %v567_v24 = vadd.f32 %v566_v15, %v565_v22  ;;  %v511_v27 = vperm.slane %v503_v17, %v1738_v12  ;;  %v539_v28 = vsel %vm336_vm8, 0.0, %v538_v16  ;;  %v399_v30 = vsel %vm336_vm8, 0.0, %v398_v14 }
 0x14c   :  { %v491_v31 = vsel %vm336_vm8, 0.0, %v490_v19  ;;  %v422_v33 = vrot.slane %v397_v44, 4  ;;  %v526_v34 = vrot.slane %v501_v20, 4  ;;  %v435_v36 = vsel %vm336_vm8, 0.0, %v434_v23 }
 0x14d   :  { %553 = vadd.xlane.f32.xlu1 %v552_v3  ;;  %v601_v37 = vsel %vm544_vm9, %v539_v28, 0.0  ;;  %v387_v39 = vsel %vm336_vm8, 0.0, %v386_v26  ;;  %v407_v42 = vperm.slane %v399_v30, %v1738_v12  ;;  %v581_v43 = vsel %vm544_vm9, %v491_v31, 0.0 }
 0x14e   :  { %578 = vadd.xlane.f32.xlu2 %v577_v6  ;;  %v527_v45 = vsel %vm336_vm8, %v511_v27, %v526_v34  ;;  %v600_v47 = vsel %vm544_vm9, %v435_v36, 0.0  ;;  %v488_v48 = vrot.slane %v479_v9, 4  ;;  %v580_v50 = vsel %vm544_vm9, %v387_v39, 0.0 }
 0x14f   :  { %v602_v49 = vadd.f32 %v601_v37, %v600_v47  ;;  %v423_v51 = vsel %vm336_vm8, %v407_v42, %v422_v33  ;;  %v582_v59 = vadd.f32 %v581_v43, %v580_v50  ;;  %v535_v60 = vperm.slane %v527_v45, %v1750_v40 }
 0x150   :  { %v384_v62 = vrot.slane %v375_v10, 4  ;;  %v524_v63 = vrot.slane %v511_v27, 4  ;;  %v512_v12 = vrot.slane %v1796_v38, 4  ;;  %v431_v2 = vperm.slane %v423_v51, %v1750_v40  ;;  %v847_v51 = vpop.permute.xlu2 %846 }
 0x151   :  { %v489_v3 = vsel %vm336_vm8, 0.0, %v488_v48  ;;  %v420_v56 = vrot.slane %v407_v42, 4  ;;  %v408_v4 = vrot.slane %v1807_v53, 4  ;;  %v616_v5 = vsel %vm544_vm9, %v535_v60, 0.0  ;;  %v1889_v48 = vpop.f32.mrf.mxu3 }
 0x152   :  { %v385_v6 = vsel %vm336_vm8, 0.0, %v384_v62  ;;  %v571_v7 = vsel %vm544_vm9, %v489_v3, 0.0  ;;  %v525_v8 = vsel %vm336_vm8, %v524_v63, %v501_v20  ;;  %v615_v9 = vsel %vm544_vm9, %v431_v2, 0.0  ;;  %v1483_v3 = vld [vmem:[%s2045_s5 + $0x10] sm:$0xff] }
 0x153   :  { %v513_v38 = vsel %vm336_vm8, %v512_v12, %v1788_v29  ;;  %v617_v52 = vadd.f32 %v616_v5, %v615_v9  ;;  %v570_v32 = vsel %vm544_vm9, %v385_v6, 0.0  ;;  %v421_v46 = vsel %vm336_vm8, %v420_v56, %v397_v44  ;;  %1333 = vmatmul.msk.bf16.vlgmr.msra.gmra.mxu2 %vm98_vm5, %v1483_v3 }
 0x154   :  { %v572_v10 = vadd.f32 %v571_v7, %v570_v32  ;;  %v531_v53 = vperm.slane %v525_v8, %v1750_v40  ;;  %v409_v11 = vsel %vm336_vm8, %v408_v4, %v1769_v1  ;;  %v519_v13 = vperm.slane %v513_v38, %v1750_v40  ;;  %v1484_v8 = vld [vmem:[%s2045_s5 + $0x18] sm:$0xff] }
 0x155   :  { %598 = vadd.xlane.f32.xlu1 %v597_v21  ;;  %v427_v14 = vperm.slane %v421_v46, %v1750_v40  ;;  %v415_v15 = vperm.slane %v409_v11, %v1750_v40  ;;  %v542_v17 = vrot.slane %v535_v60, 4  ;;  %v438_v1 = vrot.slane %v431_v2, 4  ;;  %v837_v60 = vpop.permute.xlu1 %836 }
 0x156   :  { %568 = vadd.xlane.f32.xlu2 %v567_v24  ;;  %v606_v29 = vsel %vm544_vm9, %v531_v53, 0.0  ;;  %v586_v16 = vsel %vm544_vm9, %v519_v13, 0.0  ;;  %v536_v18 = vrot.slane %v519_v13, 4  ;;  %v540_v30 = vrot.slane %v531_v53, 4 }
 0x157   :  { %851 = vperm.xlu0 %1528, %v1837_v25   ;;  %v605_v44 = vsel %vm544_vm9, %v427_v14, 0.0  ;;  %v585_v20 = vsel %vm544_vm9, %v415_v15, 0.0  ;;  %v432_v22 = vrot.slane %v415_v15, 4  ;;  %v543_v23 = vsel %vm336_vm8, 0.0, %v542_v17 }
 0x158   :  { %v607_v19 = vadd.f32 %v606_v29, %v605_v44  ;;  %v587_v21 = vadd.f32 %v586_v16, %v585_v20  ;;  %v537_v40 = vsel %vm336_vm8, 0.0, %v536_v18  ;;  %v439_v24 = vsel %vm336_vm8, 0.0, %v438_v1  ;;  %v842_v62 = vpop.permute.xlu2 %841 }
 0x159   :  { %v621_v26 = vsel %vm544_vm9, %v543_v23, 0.0  ;;  %v433_v27 = vsel %vm336_vm8, 0.0, %v432_v22  ;;  %v591_v28 = vsel %vm544_vm9, %v537_v40, 0.0  ;;  %v620_v31 = vsel %vm544_vm9, %v439_v24, 0.0 }
 0x15a   :  { %v622_v33 = vadd.f32 %v621_v26, %v620_v31  ;;  %v590_v34 = vsel %vm544_vm9, %v433_v27, 0.0  ;;  %v436_v36 = vrot.slane %v427_v14, 4  ;;  %v541_v39 = vsel %vm336_vm8, 0.0, %v540_v30 }
 0x15b   :  { %v592_v37 = vadd.f32 %v591_v28, %v590_v34  ;;  %v611_v43 = vsel %vm544_vm9, %v541_v39, 0.0  ;;  %v1554_v26 = vmov 0  }
 0x15c   :  { %v437_v42 = vsel %vm336_vm8, 0.0, %v436_v36 }
 0x15d   :  { %603 = vadd.xlane.f32.xlu1 %v602_v49  ;;  %v610_v45 = vsel %vm544_vm9, %v437_v42, 0.0  ;;  %v1891_v49 = vpop.f32.mrf.mxu3  ;;  %v832_v12 = vpop.permute.xlu1 %831  ;;  %v1555_v42 = vmov 2  }
 0x15e   :  { %583 = vadd.xlane.f32.xlu2 %v582_v59  ;;  %v612_v47 = vadd.f32 %v611_v43, %v610_v45 }
 0x15f   :  { %1530 = vset.pattern.permute.xlu0 %v1554_v26 }
 0x160   :  { %v827_v2 = vpop.permute.xlu2 %826  ;;  %154 = vperm.xlu0 %1530, %v1735_v61  }
 0x163   :  { %1334 = vmatmul.msk.bf16.gmra.mxu2 %vm98_vm5, %v1484_v8 }
 0x165   :  { %618 = vadd.xlane.f32.xlu1 %v617_v52  ;;  %v905_v50 = vpop.f32.mrf.mxu3 }
 0x166   :  { %573 = vadd.xlane.f32.xlu2 %v572_v10  ;;  %v906_v18 = vadd.f32 %v905_v50, %v827_v2 }
 0x168   :  { %v922_v23 = vmax.f32 %v906_v18, 0.0  ;;  %1534 = vset.pattern.permute.xlu0 %v1555_v42 }
 0x169   :  { %682 = vperm.xlu0 %1534, %v1713_v57  }
 0x16d   :  { %608 = vadd.xlane.f32.xlu1 %v607_v19  ;;  %v907_v59 = vpop.f32.mrf.mxu3 }
 0x16e   :  { %588 = vadd.xlane.f32.xlu2 %v587_v21  ;;  %v908_v44 = vadd.f32 %v907_v59, %v832_v12 }
 0x170   :  { %v923_v22 = vmax.f32 %v908_v44, 0.0 }
 0x172   :  { %v933_v40 = vpack.c.bf16 %v923_v22, %v922_v23 }
 0x175   :  { %623 = vadd.xlane.f32.xlu1 %v622_v33  ;;  %v910_v63 = vpop.f32.mrf.mxu3 }
 0x176   :  { %593 = vadd.xlane.f32.xlu2 %v592_v37  ;;  %v911_v10 = vadd.f32 %v910_v63, %v837_v60 }
 0x178   :  { %v924_v16 = vmax.f32 %v911_v10, 0.0 }
 0x17d   :  { %613 = vadd.xlane.f32.xlu1 %v612_v47  ;;  %v912_v56 = vpop.f32.mrf.mxu3  ;;  %v1913_v47 = vand.u32 127, %v28_v0 }
 0x17e   :  { %v913_v13 = vadd.f32 %v912_v56, %v842_v62 }
 0x180   :  { %v925_v17 = vmax.f32 %v913_v13, 0.0 }
 0x182   :  { %v934_v21 = vpack.c.bf16 %v925_v17, %v924_v16 }
 0x185   :  { %v915_v6 = vpop.f32.mrf.mxu3 }
 0x186   :  { %v916_v32 = vadd.f32 %v915_v6, %v847_v51 }
 0x188   :  { %v926_v15 = vmax.f32 %v916_v32, 0.0 }
 0x18d   :  { %v917_v52 = vpop.f32.mrf.mxu3 }
 0x18e   :  { %816 = vperm.xlu2 %1527, %v1656_v35  }
 0x196   :  { %821 = vperm.xlu1 %1529, %v1670_v41   ;;  %1531 = vset.pattern.permute.xlu2 %v1554_v26 }
 0x197   :  { %159 = vperm.xlu2 %1531, %v1713_v57  }
 0x19e   :  { %1532 = vset.pattern.permute.xlu1 %v1554_v26 }
 0x19f   :  { %144 = vperm.xlu1 %1532, %v1656_v35   ;;  %149 = vperm.xlu2 %1531, %v1670_v41  }
 0x1a7   :  { %1533 = vset.pattern.permute.xlu1 %v1555_v42 }
 0x1a8   :  { %677 = vperm.xlu1 %1533, %v1735_v61  }
 0x1b6   :  { %v559_v9 = vpop.xlane.xlu0 %558 }
 0x1b7   :  { %v627_v33 = vmul.f32 0.00390625, %v559_v9 }
 0x1b8   :  { %v549_v4 = vpop.xlane.xlu1 %548 }
 0x1b9   :  { %v564_v5 = vpop.xlane.xlu2 %563  ;;  %v625_v30 = vmul.f32 0.00390625, %v549_v4  ;;  %v647_v50 = vpack.c.bf16 %v627_v33, %v627_v33 }
 0x1ba   :  { %v628_v37 = vmul.f32 0.00390625, %v564_v5 }
 0x1bb   :  { %v645_v36 = vpack.c.bf16 %v625_v30, %v625_v30  ;;  %v713_v56 = vunpack.c.l.b16 %v647_v50  ;;  %v1556_v30 = vmov 4  }
 0x1bc   :  { %v648_v60 = vpack.c.bf16 %v628_v37, %v628_v37  ;;  %1536 = vset.pattern.permute.xlu1 %v1556_v30  ;;  %1539 = vset.pattern.permute.xlu0 %v1556_v30 }
 0x1bd   :  { %v711_v59 = vunpack.c.l.b16 %v645_v36  ;;  %949 = vperm.xlu1 %1536, %v1713_v57   ;;  %937 = vperm.xlu0 %1539, %v1656_v35  }
 0x1be   :  { %v714_v6 = vunpack.c.l.b16 %v648_v60  ;;  %1535 = vset.pattern.permute.xlu2 %v1556_v30 }
 0x1bf   :  { %v729_v0 = vperm.slane %v711_v59, %v1913_v47  ;;  %945 = vperm.xlu2 %1535, %v1735_v61  }
 0x1c0   :  { %v554_v7 = vpop.xlane.xlu1 %553  ;;  %v732_v17 = vperm.slane %v714_v6, %v1913_v47 }
 0x1c1   :  { %v1902_v38 = vpop.xlane.xlu2 %578  ;;  %v626_v28 = vmul.f32 0.00390625, %v554_v7 }
 0x1c3   :  { %v646_v31 = vpack.c.bf16 %v626_v28, %v626_v28 }
 0x1c5   :  { %v712_v43 = vunpack.c.l.b16 %v646_v31  ;;  %1538 = vset.pattern.permute.xlu1 %v1555_v42 }
 0x1c6   :  { %672 = vperm.xlu1 %1538, %v1670_v41  }
 0x1c7   :  { %v730_v12 = vperm.slane %v712_v43, %v1913_v47  ;;  %1537 = vset.pattern.permute.xlu2 %v1555_v42 }
 0x1c8   :  { %v599_v46 = vpop.xlane.xlu1 %598  ;;  %667 = vperm.xlu2 %1537, %v1656_v35   ;;  %v1495_v35 = vld [vmem:[%s2045_s5 + $0x30] sm:$0xff] }
 0x1c9   :  { %v852_v53 = vpop.permute.xlu0 %851  ;;  %v569_v11 = vpop.xlane.xlu2 %568  ;;  %v635_v62 = vmul.f32 0.00390625, %v599_v46  ;;  %v746_v10 = vsel %vm745_vm10, %v730_v12, %v729_v0 }
 0x1ca   :  { %v918_v14 = vadd.f32 %v917_v52, %v852_v53  ;;  %v629_v45 = vmul.f32 0.00390625, %v569_v11  ;;  %v631_v52 = vmul.f32 0.00390625, %v1902_v38 }
 0x1cb   :  { %v655_v7 = vpack.c.bf16 %v635_v62, %v635_v62 }
 0x1cc   :  { %v927_v29 = vmax.f32 %v918_v14, 0.0  ;;  %v649_v2 = vpack.c.bf16 %v629_v45, %v629_v45  ;;  %v731_v14 = vperm.slane %v713_v56, %v1913_v47 }
 0x1cd   :  { %v721_v44 = vunpack.c.l.b16 %v655_v7 }
 0x1ce   :  { %v935_v19 = vpack.c.bf16 %v927_v29, %v926_v15  ;;  %v715_v53 = vunpack.c.l.b16 %v649_v2  ;;  %v748_v38 = vsel %vm747_vm11, %v731_v14, %v746_v10 }
 0x1cf   :  { %v739_v31 = vperm.slane %v721_v44, %v1913_v47  ;;  %v750_v45 = vsel %vm749_vm12, %v732_v17, %v748_v38  ;;  %v1500_v44 = vld [vmem:[%s2045_s5 + $0x58] sm:$0xff] }
 0x1d0   :  { %973 = vmatpush.bf16.msra.mxu0 %v935_v19  ;;  %v604_v20 = vpop.xlane.xlu1 %603  ;;  %v733_v23 = vperm.slane %v715_v53, %v1913_v47  ;;  %1540 = vset.pattern.permute.xlu2 %v1556_v30 }
 0x1d1   :  { %v584_v1 = vpop.xlane.xlu2 %583  ;;  %v636_v3 = vmul.f32 0.00390625, %v604_v20  ;;  %v651_v20 = vpack.c.bf16 %v631_v52, %v631_v52  ;;  %941 = vperm.xlu2 %1540, %v1670_v41   ;;  %v1501_v41 = vld [vmem:[%s2045_s5 + $0x60] sm:$0xff] }
 0x1d2   :  { %v632_v13 = vmul.f32 0.00390625, %v584_v1  ;;  %v752_v60 = vsel %vm751_vm13, %v733_v23, %v750_v45  ;;  %v1557_v45 = vmov 5  }
 0x1d3   :  { %v656_v11 = vpack.c.bf16 %v636_v3, %v636_v3  ;;  %v717_v37 = vunpack.c.l.b16 %v651_v20  ;;  %v155_v20 = vpop.permute.xlu0 %154  ;;  %1541 = vset.pattern.permute.xlu1 %v1557_v45  ;;  %1543 = vset.pattern.permute.xlu0 %v1557_v45 }
 0x1d4   :  { %974 = vmatpush.bf16.msra.mxu0 %v934_v21  ;;  %v652_v26 = vpack.c.bf16 %v632_v13, %v632_v13  ;;  %v1494_v13 = vld [vmem:[%s2045_s5 + $0x28] sm:$0xff]  ;;  %1238 = vperm.xlu1 %1541, %v1706_v55  }
 0x1d5   :  { %1234 = vperm.xlu0 %1543, %v1718_v58   ;;  %v1547_v58 = vld [vmem:[%s2046_s6] sm:$0xff] }
 0x1d6   :  { %v718_v62 = vunpack.c.l.b16 %v652_v26 }
 0x1d8   :  { %975 = vmatpush.bf16.msra.mxu0 %v933_v40  ;;  %v619_v24 = vpop.xlane.xlu1 %618  ;;  %v722_v40 = vunpack.c.l.b16 %v656_v11 }
 0x1d9   :  { %v574_v27 = vpop.xlane.xlu2 %573  ;;  %v639_v15 = vmul.f32 0.00390625, %v619_v24  ;;  %1542 = vset.pattern.permute.xlu2 %v1557_v45 }
 0x1da   :  { %v630_v63 = vmul.f32 0.00390625, %v574_v27  ;;  %v740_v50 = vperm.slane %v722_v40, %v1913_v47  ;;  %1242 = vperm.xlu2 %1542, %v1837_v25  }
 0x1db   :  { %v659_v1 = vpack.c.bf16 %v639_v15, %v639_v15 }
 0x1dc   :  { %v650_v8 = vpack.c.bf16 %v630_v63, %v630_v63  ;;  %1230 = vperm.xlu1 %1541, %v1701_v54  }
 0x1dd   :  { %v725_v63 = vunpack.c.l.b16 %v659_v1 }
 0x1de   :  { %v716_v18 = vunpack.c.l.b16 %v650_v8 }
 0x1df   :  { %v743_v6 = vperm.slane %v725_v63, %v1913_v47 }
 0x1e0   :  { %v609_v34 = vpop.xlane.xlu1 %608  ;;  %v734_v33 = vperm.slane %v716_v18, %v1913_v47 }
 0x1e1   :  { %v589_v39 = vpop.xlane.xlu2 %588  ;;  %v637_v32 = vmul.f32 0.00390625, %v609_v34 }
 0x1e2   :  { %v633_v51 = vmul.f32 0.00390625, %v589_v39  ;;  %v754_v3 = vsel %vm753_vm14, %v734_v33, %v752_v60  ;;  %1222 = vperm.xlu2 %1542, %v1735_v61  }
 0x1e3   :  { %v657_v21 = vpack.c.bf16 %v637_v32, %v637_v32 }
 0x1e4   :  { %v653_v4 = vpack.c.bf16 %v633_v51, %v633_v51  ;;  %1226 = vperm.xlu1 %1541, %v1713_v57   ;;  %v1506_v57 = vld [vmem:[%s2045_s5 + $0x88] sm:$0xff] }
 0x1e5   :  { %v723_v39 = vunpack.c.l.b16 %v657_v21 }
 0x1e6   :  { %v719_v29 = vunpack.c.l.b16 %v653_v4  ;;  %v735_v4 = vperm.slane %v717_v37, %v1913_v47 }
 0x1e8   :  { %v624_v5 = vpop.xlane.xlu1 %623  ;;  %v737_v24 = vperm.slane %v719_v29, %v1913_v47  ;;  %v756_v7 = vsel %vm755_vm15, %v735_v4, %v754_v3 }
 0x1e9   :  { %v594_v9 = vpop.xlane.xlu2 %593  ;;  %v640_v19 = vmul.f32 0.00390625, %v624_v5  ;;  %v741_v5 = vperm.slane %v723_v39, %v1913_v47 }
 0x1ea   :  { %v634_v46 = vmul.f32 0.00390625, %v594_v9  ;;  %v736_v9 = vperm.slane %v718_v62, %v1913_v47  ;;  %1214 = vperm.xlu2 %1542, %v1547_v58  }
 0x1eb   :  { %v660_v34 = vpack.c.bf16 %v640_v19, %v640_v19 }
 0x1ec   :  { %v654_v16 = vpack.c.bf16 %v634_v46, %v634_v46  ;;  %v758_v10 = vsel %vm757_vm0, %v736_v9, %v756_v7 }
 0x1ed   :  { %v726_v12 = vunpack.c.l.b16 %v660_v34  ;;  %v1502_v34 = vld [vmem:[%s2045_s5 + $0x68] sm:$0xff] }
 0x1ee   :  { %v720_v22 = vunpack.c.l.b16 %v654_v16 }
 0x1ef   :  { %v744_v52 = vperm.slane %v726_v12, %v1913_v47 }
 0x1f0   :  { %v738_v27 = vperm.slane %v720_v22, %v1913_v47  ;;  %v614_v28 = vpop.xlane.xlu1 %613 }
 0x1f1   :  { %v638_v36 = vmul.f32 0.00390625, %v614_v28 }
 0x1f2   :  { %v759_v43 = vsel %vm745_vm10, %v738_v27, %v737_v24 }
 0x1f3   :  { %v760_v51 = vsel %vm747_vm11, %v739_v31, %v759_v43  ;;  %v658_v59 = vpack.c.bf16 %v638_v36, %v638_v36 }
 0x1f4   :  { %v761_v56 = vsel %vm749_vm12, %v740_v50, %v760_v51 }
 0x1f5   :  { %v724_v2 = vunpack.c.l.b16 %v658_v59  ;;  %v762_v8 = vsel %vm751_vm13, %v741_v5, %v761_v56  ;;  %v1503_v59 = vld [vmem:[%s2045_s5 + $0x70] sm:$0xff] }
 0x1f7   :  { %v742_v0 = vperm.slane %v724_v2, %v1913_v47  ;;  %v817_v47 = vpop.permute.xlu2 %816  ;;  %v683_v2 = vpop.permute.xlu0 %682 }
 0x1f8   :  { %v901_v14 = vadd.f32 %v1889_v48, %v817_v47  ;;  %v187_v48 = vpop.f32.mrf.mxu2 }
 0x1f9   :  { %v763_v32 = vsel %vm753_vm14, %v742_v0, %v762_v8  ;;  %v1504_v8 = vld [vmem:[%s2045_s5 + $0x78] sm:$0xff] }
 0x1fa   :  { %v764_v46 = vsel %vm755_vm15, %v743_v6, %v763_v32  ;;  %v920_v42 = vmax.f32 %v901_v14, 0.0 }
 0x1fb   :  { %v765_v53 = vsel %vm757_vm0, %v744_v52, %v764_v46 }
 0x1fc   :  { %v766_v11 = vpack.c.b16 %v765_v53, %v758_v10 }
 0x1fe   :  { %781 = vmatpush.bf16.msrb.mxu2 %v766_v11 }
 0x1ff   :  { %v160_v18 = vpop.permute.xlu2 %159 }
 0x201   :  { %1383 = vmatmul.msk.bf16.vlgmr.msrb.gmra.mxu2 %vm56_vm4, %v1494_v13  ;;  %v1548_v13 = vld [vmem:[%s2046_s6 + $0x8] sm:$0xff] }
 0x202   :  { %1218 = vperm.xlu1 %1541, %v1548_v13  }
 0x207   :  { %v150_v38 = vpop.permute.xlu2 %149 }
 0x208   :  { %v822_v15 = vpop.permute.xlu1 %821 }
 0x209   :  { %v903_v29 = vadd.f32 %v1891_v49, %v822_v15  ;;  %v189_v49 = vpop.f32.mrf.mxu2 }
 0x20a   :  { %v190_v40 = vadd.f32 %v189_v49, %v150_v38  ;;  %v1508_v49 = vld [vmem:[%s2045_s5 + $0x98] sm:$0xff]  ;;  %v1513_v38 = vld [vmem:[%s2045_s5 + $0xc0] sm:$0xff] }
 0x20b   :  { %v921_v16 = vmax.f32 %v903_v29, 0.0 }
 0x20c   :  { %v198_v30 = vmax.f32 %v190_v40, 0.0 }
 0x20d   :  { %v932_v17 = vpack.c.bf16 %v921_v16, %v920_v42 }
 0x20f   :  { %976 = vmatpush.bf16.msra.mxu0 %v932_v17 }
 0x211   :  { %1384 = vmatmul.msk.bf16.gmra.mxu2 %vm56_vm4, %v1495_v35  ;;  %v192_v19 = vpop.f32.mrf.mxu2  ;;  %v145_v22 = vpop.permute.xlu1 %144  ;;  %v1510_v35 = vld [vmem:[%s2045_s5 + $0xa8] sm:$0xff] }
 0x212   :  { %1413 = vmatmul.msk.bf16.vlgmr.msra.gmra.mxu0 %vm962_vm1, %v1500_v44  ;;  %v193_v21 = vadd.f32 %v192_v19, %v155_v20  ;;  %v188_v23 = vadd.f32 %v187_v48, %v145_v22  ;;  %v1505_v44 = vld [vmem:[%s2045_s5 + $0x80] sm:$0xff]  ;;  %v1511_v48 = vld [vmem:[%s2045_s5 + $0xb0] sm:$0xff] }
 0x213   :  { %v1509_v19 = vld [vmem:[%s2045_s5 + $0xa0] sm:$0xff] }
 0x214   :  { %v199_v1 = vmax.f32 %v193_v21, 0.0  ;;  %v197_v28 = vmax.f32 %v188_v23, 0.0 }
 0x216   :  { %v1000_v33 = vpack.c.bf16 %v198_v30, %v197_v28 }
 0x219   :  { %v194_v26 = vpop.f32.mrf.mxu2  ;;  %v946_v51 = vpop.permute.xlu2 %945 }
 0x21a   :  { %v195_v24 = vadd.f32 %v194_v26, %v160_v18  ;;  %v678_v37 = vpop.permute.xlu1 %677  ;;  %v1512_v18 = vld [vmem:[%s2045_s5 + $0xb8] sm:$0xff] }
 0x21c   :  { %v200_v27 = vmax.f32 %v195_v24, 0.0 }
 0x21e   :  { %v1001_v31 = vpack.c.bf16 %v200_v27, %v199_v1 }
 0x220   :  { %1111 = vmatpush.bf16.msra.mxu2 %v1001_v31 }
 0x222   :  { %1414 = vmatmul.msk.bf16.gmra.mxu0 %vm962_vm1, %v1501_v41  ;;  %v668_v12 = vpop.permute.xlu2 %667  ;;  %v1507_v41 = vld [vmem:[%s2045_s5 + $0x90] sm:$0xff] }
 0x224   :  { %1112 = vmatpush.bf16.msra.mxu2 %v1000_v33 }
 0x227   :  { %1451 = vmatmul.msk.bf16.vlgmr.msra.gmra.mxu2 %vm98_vm5, %v1502_v34 }
 0x22b   :  { %v942_v52 = vpop.permute.xlu2 %941 }
 0x22f   :  { %v950_v50 = vpop.permute.xlu1 %949  ;;  %v938_v46 = vpop.permute.xlu0 %937 }
 0x237   :  { %1452 = vmatmul.msk.bf16.gmra.mxu2 %vm98_vm5, %v1503_v59 }
 0x238   :  { %v673_v63 = vpop.permute.xlu1 %672 }
 0x247   :  { %1453 = vmatmul.msk.bf16.gmra.mxu2 %vm98_vm5, %v1504_v8  ;;  %v1235_v8 = vpop.permute.xlu0 %1234 }
 0x257   :  { %1454 = vmatmul.msk.bf16.gmra.mxu2 %vm98_vm5, %v1505_v44 }
 0x284   :  { %v783_v36 = vpop.f32.mrf.mxu2 }
 0x285   :  { %v784_v56 = vadd.f32 %v783_v36, %v668_v12 }
 0x287   :  { %v793_v61 = vmax.f32 %v784_v56, 0.0 }
 0x28c   :  { %v785_v39 = vpop.f32.mrf.mxu2 }
 0x28d   :  { %v786_v3 = vadd.f32 %v785_v39, %v673_v63  ;;  %v1243_v63 = vpop.permute.xlu2 %1242 }
 0x28f   :  { %v978_v43 = vpop.f32.mrf.mxu0  ;;  %v794_v54 = vmax.f32 %v786_v3, 0.0 }
 0x290   :  { %v979_v47 = vadd.f32 %v978_v43, %v938_v46 }
 0x291   :  { %v1010_v9 = vpack.c.bf16 %v794_v54, %v793_v61 }
 0x292   :  { %v988_v16 = vmax.f32 %v979_v47, 0.0 }
 0x294   :  { %v788_v60 = vpop.f32.mrf.mxu2 }
 0x295   :  { %v789_v55 = vadd.f32 %v788_v60, %v678_v37  ;;  %v1223_v58 = vpop.permute.xlu2 %1222 }
 0x297   :  { %v980_v62 = vpop.f32.mrf.mxu0  ;;  %v795_v5 = vmax.f32 %v789_v55, 0.0  ;;  %v1267_v55 = vld [vmem:[%s2046_s6] sm:$0xff] }
 0x298   :  { %v981_v53 = vadd.f32 %v980_v62, %v942_v52 }
 0x29a   :  { %v989_v29 = vmax.f32 %v981_v53, 0.0 }
 0x29c   :  { %v790_v25 = vpop.f32.mrf.mxu2  ;;  %v1142_v17 = vpack.c.bf16 %v989_v29, %v988_v16 }
 0x29d   :  { %v791_v4 = vadd.f32 %v790_v25, %v683_v2  ;;  %v1558_v25 = vmov 6  }
 0x29e   :  { %1544 = vset.pattern.permute.xlu0 %v1558_v25 }
 0x29f   :  { %v796_v0 = vmax.f32 %v791_v4, 0.0  ;;  %v983_v6 = vpop.f32.mrf.mxu0  ;;  %1271 = vperm.xlu0 %1544, %v1267_v55  }
 0x2a0   :  { %v984_v32 = vadd.f32 %v983_v6, %v946_v51 }
 0x2a1   :  { %v1011_v7 = vpack.c.bf16 %v796_v0, %v795_v5 }
 0x2a2   :  { %v990_v14 = vmax.f32 %v984_v32, 0.0 }
 0x2a3   :  { %1050 = vmatpush.bf16.msrb.mxu1 %v1011_v7 }
 0x2a7   :  { %v985_v10 = vpop.f32.mrf.mxu0  ;;  %1051 = vmatpush.bf16.msrb.mxu1 %v1010_v9 }
 0x2a8   :  { %v986_v11 = vadd.f32 %v985_v10, %v950_v50  ;;  %v1239_v50 = vpop.permute.xlu1 %1238 }
 0x2aa   :  { %v991_v15 = vmax.f32 %v986_v11, 0.0  ;;  %1431 = vmatmul.msk.bf16.vlgmr.msrb.gmra.mxu1 %vm98_vm5, %v1506_v57  ;;  %v1114_v20 = vpop.f32.mrf.mxu2 }
 0x2ac   :  { %v1143_v42 = vpack.c.bf16 %v991_v15, %v990_v14 }
 0x2ae   :  { %1182 = vmatpush.bf16.msrb.mxu0 %v1143_v42 }
 0x2b0   :  { %v1231_v62 = vpop.permute.xlu1 %1230 }
 0x2b2   :  { %1183 = vmatpush.bf16.msrb.mxu0 %v1142_v17  ;;  %v1116_v23 = vpop.f32.mrf.mxu2 }
 0x2b5   :  { %1471 = vmatmul.msk.bf16.vlgmr.msrb.gmra.mxu0 %vm98_vm5, %v1510_v35 }
 0x2b8   :  { %v1227_v6 = vpop.permute.xlu1 %1226 }
 0x2ba   :  { %1432 = vmatmul.msk.bf16.gmra.mxu1 %vm98_vm5, %v1507_v41  ;;  %v1119_v24 = vpop.f32.mrf.mxu2 }
 0x2c0   :  { %v1219_v44 = vpop.permute.xlu1 %1218 }
 0x2c2   :  { %v1121_v30 = vpop.f32.mrf.mxu2 }
 0x2c5   :  { %1472 = vmatmul.msk.bf16.gmra.mxu0 %vm98_vm5, %v1511_v48 }
 0x2ca   :  { %1433 = vmatmul.msk.bf16.gmra.mxu1 %vm98_vm5, %v1508_v49  ;;  %v1124_v34 = vpop.f32.mrf.mxu2  ;;  %v1215_v49 = vpop.permute.xlu2 %1214 }
 0x2d2   :  { %v1126_v39 = vpop.f32.mrf.mxu2 }
 0x2d5   :  { %1473 = vmatmul.msk.bf16.gmra.mxu0 %vm98_vm5, %v1512_v18 }
 0x2da   :  { %1434 = vmatmul.msk.bf16.gmra.mxu1 %vm98_vm5, %v1509_v19  ;;  %v1129_v60 = vpop.f32.mrf.mxu2 }
 0x2e2   :  { %v1131_v56 = vpop.f32.mrf.mxu2 }
 0x2e5   :  { %1474 = vmatmul.msk.bf16.gmra.mxu0 %vm98_vm5, %v1513_v38 }
 0x327   :  { %v1053_v21 = vpop.f32.mrf.mxu1 }
 0x328   :  { %v1115_v22 = vadd.f32 %v1114_v20, %v1053_v21 }
 0x32f   :  { %v1055_v40 = vpop.f32.mrf.mxu1 }
 0x330   :  { %v1117_v13 = vadd.f32 %v1116_v23, %v1055_v40 }
 0x332   :  { %v1185_v26 = vpop.f32.mrf.mxu0 }
 0x333   :  { %v1205_v1 = vadd.f32 %v1185_v26, %v1115_v22 }
 0x335   :  { %v1245_v20 = vadd.f32 %v1215_v49, %v1205_v1 }
 0x337   :  { %v1058_v27 = vpop.f32.mrf.mxu1  ;;  %v1253_v40 = vmax.f32 %v1245_v20, 0.0 }
 0x338   :  { %v1120_v7 = vadd.f32 %v1119_v24, %v1058_v27  ;;  %v1514_v24 = vld [vmem:[%s2045_s5 + $0xc8] sm:$0xff]  ;;  %v1272_v27 = vpop.permute.xlu0 %1271 }
 0x33a   :  { %v1187_v28 = vpop.f32.mrf.mxu0 }
 0x33b   :  { %v1206_v42 = vadd.f32 %v1187_v28, %v1117_v13 }
 0x33d   :  { %v1246_v18 = vadd.f32 %v1219_v44, %v1206_v42 }
 0x33f   :  { %v1060_v31 = vpop.f32.mrf.mxu1  ;;  %v1254_v22 = vmax.f32 %v1246_v18, 0.0 }
 0x340   :  { %v1122_v52 = vadd.f32 %v1121_v30, %v1060_v31 }
 0x341   :  { %v1263_v26 = vpack.c.bf16 %v1254_v22, %v1253_v40 }
 0x342   :  { %v1190_v33 = vpop.f32.mrf.mxu0 }
 0x343   :  { %v1207_v47 = vadd.f32 %v1190_v33, %v1120_v7 }
 0x345   :  { %v1247_v41 = vadd.f32 %v1223_v58, %v1207_v47 }
 0x347   :  { %v1063_v36 = vpop.f32.mrf.mxu1  ;;  %v1255_v21 = vmax.f32 %v1247_v41, 0.0 }
 0x348   :  { %v1125_v4 = vadd.f32 %v1124_v34, %v1063_v36 }
 0x34a   :  { %v1192_v37 = vpop.f32.mrf.mxu0 }
 0x34b   :  { %v1208_v10 = vadd.f32 %v1192_v37, %v1122_v52 }
 0x34d   :  { %v1248_v16 = vadd.f32 %v1227_v6, %v1208_v10 }
 0x34f   :  { %v1065_v43 = vpop.f32.mrf.mxu1  ;;  %v1256_v19 = vmax.f32 %v1248_v16, 0.0 }
 0x350   :  { %v1127_v5 = vadd.f32 %v1126_v39, %v1065_v43 }
 0x351   :  { %v1264_v23 = vpack.c.bf16 %v1256_v19, %v1255_v21 }
 0x352   :  { %v1195_v45 = vpop.f32.mrf.mxu0 }
 0x353   :  { %v1209_v32 = vadd.f32 %v1195_v45, %v1125_v4 }
 0x355   :  { %v1249_v14 = vadd.f32 %v1231_v62, %v1209_v32 }
 0x357   :  { %v1068_v59 = vpop.f32.mrf.mxu1  ;;  %v1257_v48 = vmax.f32 %v1249_v14, 0.0 }
 0x358   :  { %v1130_v2 = vadd.f32 %v1129_v60, %v1068_v59 }
 0x35a   :  { %v1197_v51 = vpop.f32.mrf.mxu0 }
 0x35b   :  { %v1210_v54 = vadd.f32 %v1197_v51, %v1127_v5 }
 0x35d   :  { %v1250_v53 = vadd.f32 %v1235_v8, %v1210_v54 }
 0x35f   :  { %v1070_v3 = vpop.f32.mrf.mxu1  ;;  %v1258_v17 = vmax.f32 %v1250_v53, 0.0 }
 0x360   :  { %v1132_v61 = vadd.f32 %v1131_v56, %v1070_v3 }
 0x361   :  { %v1265_v38 = vpack.c.bf16 %v1258_v17, %v1257_v48 }
 0x362   :  { %v1200_v12 = vpop.f32.mrf.mxu0 }
 0x363   :  { %v1211_v0 = vadd.f32 %v1200_v12, %v1130_v2 }
 0x365   :  { %v1251_v57 = vadd.f32 %v1239_v50, %v1211_v0 }
 0x367   :  { %v1259_v15 = vmax.f32 %v1251_v57, 0.0 }
 0x36a   :  { %v1202_v9 = vpop.f32.mrf.mxu0 }
 0x36b   :  { %v1212_v46 = vadd.f32 %v1202_v9, %v1132_v61 }
 0x36d   :  { %v1252_v11 = vadd.f32 %v1243_v63, %v1212_v46 }
 0x36f   :  { %v1260_v29 = vmax.f32 %v1252_v11, 0.0 }
 0x371   :  { %v1266_v35 = vpack.c.bf16 %v1260_v29, %v1259_v15 }
 0x373   :  { %1290 = vmatpush.bf16.msrb.mxu3 %v1266_v35 }
 0x377   :  { %1291 = vmatpush.bf16.msrb.mxu3 %v1265_v38 }
 0x37b   :  { %1292 = vmatpush.bf16.msrb.mxu3 %v1264_v23 }
 0x37f   :  { %1293 = vmatpush.bf16.msrb.mxu3 %v1263_v26 }
 0x382   :  { %1479 = vmatmul.msk.bf16.vlgmr.msrb.gmra.mxu3 %vm962_vm1, %v1514_v24 }
 0x405   :  { %v1295_v28 = vpop.f32.mrf.mxu3 }
 0x406   :  { %v1296_v30 = vadd.f32 %v1295_v28, %v1272_v27 }
 0x408   :  { %1300 = vst.msk [vmem:[%s2048_s7] sm:$0xff] %vm1299_vm2, %v1296_v30 }
 0x40d   :  { %v1297_v1 = vpop.f32.mrf.mxu3 }

</bundles_post_ra>
